<compile_context>
chip_gen: v5e
topology: v5e:2x2
jax: 0.10.0
libtpu: 0.0.40
codegen_flags: <defaults>
</compile_context>

<pallas_src>
import functools

import jax
import jax.numpy as jnp
import numpy as np
from jax.experimental import pallas as pl
from jax.experimental.pallas import tpu as pltpu


def _gcn_kernel(adj_ref, x_ref, w_ref, b2_ref, out_ref, *,
                num_layers, block_batch, n_nodes, emb_dim):
    """One grid step == `block_batch` batch elements, both GCN layers fused.

    adj_ref : (Bt, N, N)  bf16 adjacency slab for this batch block
    x_ref   : (Bt, N, D)  input features (f32)
    w_ref   : (L, D, D)   stacked W_l^T (so h @ w_ref[l] == Linear without bias)
    b2_ref  : (L, 1, D)   stacked 2*b_l  (bias is applied twice in the module)
    out_ref : (Bt, N, D)  output features
    """
    # adj + I : folds the "+ W_l(inputs)" term into the same MXU contraction,
    # and its row sums are exactly denom = adj.sum(-1) + 1.
    adj = adj_ref[...].astype(jnp.float32)                            # (Bt, N, N)
    rows = jax.lax.broadcasted_iota(jnp.int32, (n_nodes, n_nodes), 0)
    cols = jax.lax.broadcasted_iota(jnp.int32, (n_nodes, n_nodes), 1)
    eye = (rows == cols).astype(jnp.float32)                          # (N, N)
    adj_pi = adj + eye[None, :, :]                                    # (Bt, N, N)

    denom = jnp.sum(adj_pi, axis=2, keepdims=True)                    # (Bt, N, 1) == adj.sum(2)+1
    inv_denom = 1.0 / denom                                           # exact reciprocal

    h = x_ref[...].astype(jnp.float32)                                # (Bt, N, D)
    flat_rows = block_batch * n_nodes

    for l in range(num_layers):                                       # static unroll (L is small)
        # (adj + I) @ h  == adj@h + h  (batched over Bt; small fraction of FLOPs)
        ax = jnp.einsum("bij,bjd->bid", adj_pi, h,
                        preferred_element_type=jnp.float32)           # (Bt, N, D)
        # Dominant matmul, flattened to M = Bt*N rows to fill the MXU:
        # (Ax + h) @ W_l^T + 2*b_l  == W_l(Ax) + W_l(h)
        pre = jnp.dot(ax.reshape(flat_rows, emb_dim), w_ref[l],
                      preferred_element_type=jnp.float32)             # (Bt*N, D)
        pre = pre.reshape(block_batch, n_nodes, emb_dim)
        pre = (pre + b2_ref[l]) * inv_denom
        h = jnp.maximum(pre, 0.0)                                     # ReLU
        # TODO(synk): training-mode gcn_dropout between layers is identity in
        # eval mode and is not implemented here.

    out_ref[...] = h.astype(out_ref.dtype)


def _pick_block_batch(B, N, D, *, vmem_budget=40 << 20):
    """Largest batch block that (a) divides B, (b) keeps >= 2 grid steps so
    v7x's two TensorCores both get work, (c) fits a modest VMEM budget with
    double-buffered blocks."""
    best = 1
    for d in range(1, B + 1):
        if B % d:
            continue
        per_step = d * (N * N * 2 + 2 * N * D * 4)   # adj(bf16) + x + out (f32)
        if 2 * per_step > vmem_budget:               # double-buffered by the pipeline
            break
        if d == 1 or B // d >= 2:
            best = d
    return best


def gcn_pallas(inputs, adj, weights, biases, *, block_batch=None, vmem_limit_bytes=None):
    """inputs: (B, N, D) f32, adj: (B, N, N) f32 (0/1 adjacency),
    weights: list of L (D, D) PyTorch-layout Linear weights, biases: list of L (D,).

    Returns (B, N, D) — identical to GCN.forward in eval mode."""
    B, N, D = inputs.shape
    L = len(weights)
    assert adj.shape == (B, N, N)

    # Stack W^T so h @ w_stack[l] == Linear(h) (minus bias); bias applied twice.
    w_stack = jnp.stack([jnp.transpose(w) for w in weights], axis=0)       # (L, D, D)
    b_stack = jnp.stack([2.0 * b for b in biases], axis=0).reshape(L, 1, D)

    # bf16 adjacency: lossless for 0/1 entries, halves adj HBM->VMEM traffic.
    adj_bf16 = adj.astype(jnp.bfloat16)

    if block_batch is None:
        block_batch = _pick_block_batch(B, N, D)
    assert B % block_batch == 0
    grid = (B // block_batch,)

    if vmem_limit_bytes is None:
        blk = block_batch * (N * N * 2 + 2 * N * D * 4)
        const = L * D * D * 4 + L * D * 4
        vmem_limit_bytes = int(min(max(4 * blk + 2 * const + (4 << 20), 32 << 20),
                                   56 << 20))   # stay under v7x's 64 MiB/TC

    kernel = functools.partial(_gcn_kernel, num_layers=L, block_batch=block_batch,
                               n_nodes=N, emb_dim=D)

    return pl.pallas_call(
        kernel,
        out_shape=jax.ShapeDtypeStruct((B, N, D), inputs.dtype),
        grid_spec=pltpu.PrefetchScalarGridSpec(
            num_scalar_prefetch=0,
            grid=grid,
            in_specs=[
                pl.BlockSpec((block_batch, N, N), lambda b: (b, 0, 0)),  # adj slab (bf16)
                pl.BlockSpec((block_batch, N, D), lambda b: (b, 0, 0)),  # features
                pl.BlockSpec((L, D, D), lambda b: (0, 0, 0)),            # W^T, constant across grid
                pl.BlockSpec((L, 1, D), lambda b: (0, 0, 0)),            # 2*bias, constant across grid
            ],
            out_specs=pl.BlockSpec((block_batch, N, D), lambda b: (b, 0, 0)),
        ),
        compiler_params=pltpu.CompilerParams(
            dimension_semantics=("parallel",),       # batch blocks independent -> megacore
            vmem_limit_bytes=vmem_limit_bytes,
        ),
    )(adj_bf16, inputs, w_stack, b_stack)


def gcn_ref(inputs, adj, weights, biases):
    """Pure-JAX reference of GCN.forward (eval mode), f32/HIGHEST precision."""
    hp = jax.lax.Precision.HIGHEST
    denom = jnp.sum(adj, axis=2, keepdims=True) + 1.0
    h = inputs
    for w, b in zip(weights, biases):
        ax = jnp.einsum("bij,bjd->bid", adj, h, precision=hp)
        axw = (jnp.einsum("bnd,ed->bne", ax, w, precision=hp) + b
               + jnp.einsum("bnd,ed->bne", h, w, precision=hp) + b)
        h = jax.nn.relu(axw / denom)
    return h


if __name__ == "__main__":
    # Small shapes consistent with the module: batch=16, nodes=16, emb_dim=128
    # (multiple of 128 for lane-dense stores), num_layers=2.  The wrapper picks
    # block_batch=8 -> M = 128 rows per weight matmul and a 2-step parallel grid.
    B, N, D, L = 16, 16, 128, 2
    key = jax.random.PRNGKey(0)
    kx, ka, *kw = jax.random.split(key, 2 + 2 * L)

    inputs = jax.random.normal(kx, (B, N, D), jnp.float32)
    adj = (jax.random.uniform(ka, (B, N, N)) < 0.3).astype(jnp.float32)

    # PyTorch nn.Linear init: U(-1/sqrt(fan_in), 1/sqrt(fan_in))
    bound = 1.0 / np.sqrt(D)
    weights, biases = [], []
    for l in range(L):
        weights.append(jax.random.uniform(kw[2 * l], (D, D), jnp.float32, -bound, bound))
        biases.append(jax.random.uniform(kw[2 * l + 1], (D,), jnp.float32, -bound, bound))

    out = gcn_pallas(inputs, adj, weights, biases)
    jax.block_until_ready(out)

    out_ref = gcn_ref(inputs, adj, weights, biases)
    # Kernel matmuls run at the MXU's default (bf16-pass) precision; the
    # reference runs at HIGHEST (f32), so allow ~1e-2-level drift.  Setting
    # HIGHEST in-kernel would match to ~1e-5 at ~3x MXU cost.
    np.testing.assert_allclose(np.asarray(out), np.asarray(out_ref), rtol=2e-2, atol=2e-2)

    print("KERNEL_OK")
</pallas_src>

<mosaic_0001>
module attributes {stable_mosaic.version = 11 : i64} {
  func.func @_gcn_kernel(%arg0: i32, %arg1: memref<8x16x16xbf16, #tpu.memory_space<vmem>>, %arg2: memref<8x16x128xf32, #tpu.memory_space<vmem>>, %arg3: memref<2x128x128xf32, #tpu.memory_space<vmem>>, %arg4: memref<2x1x128xf32, #tpu.memory_space<vmem>>, %arg5: memref<8x16x128xf32, #tpu.memory_space<vmem>>) attributes {dimension_semantics = [#tpu.dimension_semantics<parallel>], iteration_bounds = array<i64: 2>, scalar_prefetch = 0 : i64, scratch_operands = 0 : i64, tpu.core_type = #tpu.core_type<tc>, window_params = [{transform_indices = @transform_0, window_bounds = array<i64: 8, 16, 16>}, {transform_indices = @transform_1, window_bounds = array<i64: 8, 16, 128>}, {pipeline_mode = #tpu.pipeline_mode<synchronous>, transform_indices = @transform_2, window_bounds = array<i64: 2, 128, 128>}, {pipeline_mode = #tpu.pipeline_mode<synchronous>, transform_indices = @transform_3, window_bounds = array<i64: 2, 1, 128>}, {transform_indices = @transform_4, window_bounds = array<i64: 8, 16, 128>}]} {
    %c0 = arith.constant 0 : index
    %c0_0 = arith.constant 0 : index
    %c0_1 = arith.constant 0 : index
    %0 = vector.load %arg1[%c0, %c0_0, %c0_1] : memref<8x16x16xbf16, #tpu.memory_space<vmem>>, vector<8x16x16xbf16>
    %1 = arith.extf %0 : vector<8x16x16xbf16> to vector<8x16x16xf32>
    %2 = tpu.iota {dimensions = array<i32: 0>} : vector<16x16xi32>
    %3 = tpu.iota {dimensions = array<i32: 1>} : vector<16x16xi32>
    %4 = arith.cmpi eq, %2, %3 : vector<16x16xi32>
    %5 = arith.extui %4 : vector<16x16xi1> to vector<16x16xi32>
    %6 = arith.sitofp %5 : vector<16x16xi32> to vector<16x16xf32>
    %7 = vector.shape_cast %6 : vector<16x16xf32> to vector<1x16x16xf32>
    %8 = vector.broadcast %7 : vector<1x16x16xf32> to vector<8x16x16xf32>
    %9 = arith.addf %1, %8 : vector<8x16x16xf32>
    %cst = arith.constant dense<0.000000e+00> : vector<8x16xf32>
    %10 = vector.multi_reduction <add>, %9, %cst [2] : vector<8x16x16xf32> to vector<8x16xf32>
    %11 = vector.shape_cast %10 : vector<8x16xf32> to vector<8x16x1xf32>
    %cst_2 = arith.constant 1.000000e+00 : f32
    %12 = vector.broadcast %cst_2 : f32 to vector<8x16x1xf32>
    %13 = arith.divf %12, %11 : vector<8x16x1xf32>
    %c0_3 = arith.constant 0 : index
    %c0_4 = arith.constant 0 : index
    %c0_5 = arith.constant 0 : index
    %14 = vector.load %arg2[%c0_3, %c0_4, %c0_5] : memref<8x16x128xf32, #tpu.memory_space<vmem>>, vector<8x16x128xf32>
    "tpu.trace_start"() <{level = 10 : i32, message = "bij,bjd->bid"}> : () -> ()
    %cst_6 = arith.constant dense<0.000000e+00> : vector<8x16x128xf32>
    %15 = tpu.matmul %9, %14, %cst_6 {dimension_numbers = #tpu.dot_dimension_numbers<[2], [1], [1], [2], [0, 0, 0, 1, 1, 2], [0], [0]>} : vector<8x16x16xf32>, vector<8x16x128xf32>, vector<8x16x128xf32> -> vector<8x16x128xf32>
    "tpu.trace_stop"() : () -> ()
    %16 = vector.shape_cast %15 : vector<8x16x128xf32> to vector<128x128xf32>
    %c0_7 = arith.constant 0 : index
    %c0_8 = arith.constant 0 : index
    %c0_9 = arith.constant 0 : index
    %17 = vector.load %arg3[%c0_7, %c0_8, %c0_9] : memref<2x128x128xf32, #tpu.memory_space<vmem>>, vector<1x128x128xf32>
    %18 = vector.shape_cast %17 : vector<1x128x128xf32> to vector<128x128xf32>
    %cst_10 = arith.constant dense<0.000000e+00> : vector<128x128xf32>
    %19 = tpu.matmul %16, %18, %cst_10 {dimension_numbers = #tpu.dot_dimension_numbers<[1], [0], [0], [1], [0, 0, 1, 1], [], []>} : vector<128x128xf32>, vector<128x128xf32>, vector<128x128xf32> -> vector<128x128xf32>
    %20 = vector.shape_cast %19 : vector<128x128xf32> to vector<8x16x128xf32>
    %c0_11 = arith.constant 0 : index
    %c0_12 = arith.constant 0 : index
    %c0_13 = arith.constant 0 : index
    %21 = vector.load %arg4[%c0_11, %c0_12, %c0_13] : memref<2x1x128xf32, #tpu.memory_space<vmem>>, vector<1x1x128xf32>
    %22 = vector.shape_cast %21 : vector<1x1x128xf32> to vector<1x128xf32>
    %23 = vector.shape_cast %22 : vector<1x128xf32> to vector<1x1x128xf32>
    %24 = vector.broadcast %23 : vector<1x1x128xf32> to vector<8x16x128xf32>
    %25 = arith.addf %20, %24 : vector<8x16x128xf32>
    %26 = vector.broadcast %13 : vector<8x16x1xf32> to vector<8x16x128xf32>
    %27 = arith.mulf %25, %26 : vector<8x16x128xf32>
    %cst_14 = arith.constant 0.000000e+00 : f32
    %28 = vector.broadcast %cst_14 : f32 to vector<8x16x128xf32>
    %29 = arith.maximumf %27, %28 : vector<8x16x128xf32>
    "tpu.trace_start"() <{level = 10 : i32, message = "bij,bjd->bid"}> : () -> ()
    %cst_15 = arith.constant dense<0.000000e+00> : vector<8x16x128xf32>
    %30 = tpu.matmul %9, %29, %cst_15 {dimension_numbers = #tpu.dot_dimension_numbers<[2], [1], [1], [2], [0, 0, 0, 1, 1, 2], [0], [0]>} : vector<8x16x16xf32>, vector<8x16x128xf32>, vector<8x16x128xf32> -> vector<8x16x128xf32>
    "tpu.trace_stop"() : () -> ()
    %31 = vector.shape_cast %30 : vector<8x16x128xf32> to vector<128x128xf32>
    %c1 = arith.constant 1 : index
    %c0_16 = arith.constant 0 : index
    %c0_17 = arith.constant 0 : index
    %32 = vector.load %arg3[%c1, %c0_16, %c0_17] : memref<2x128x128xf32, #tpu.memory_space<vmem>>, vector<1x128x128xf32>
    %33 = vector.shape_cast %32 : vector<1x128x128xf32> to vector<128x128xf32>
    %cst_18 = arith.constant dense<0.000000e+00> : vector<128x128xf32>
    %34 = tpu.matmul %31, %33, %cst_18 {dimension_numbers = #tpu.dot_dimension_numbers<[1], [0], [0], [1], [0, 0, 1, 1], [], []>} : vector<128x128xf32>, vector<128x128xf32>, vector<128x128xf32> -> vector<128x128xf32>
    %35 = vector.shape_cast %34 : vector<128x128xf32> to vector<8x16x128xf32>
    %c1_19 = arith.constant 1 : index
    %c0_20 = arith.constant 0 : index
    %c0_21 = arith.constant 0 : index
    %36 = vector.load %arg4[%c1_19, %c0_20, %c0_21] : memref<2x1x128xf32, #tpu.memory_space<vmem>>, vector<1x1x128xf32>
    %37 = vector.shape_cast %36 : vector<1x1x128xf32> to vector<1x128xf32>
    %38 = vector.shape_cast %37 : vector<1x128xf32> to vector<1x1x128xf32>
    %39 = vector.broadcast %38 : vector<1x1x128xf32> to vector<8x16x128xf32>
    %40 = arith.addf %35, %39 : vector<8x16x128xf32>
    %41 = vector.broadcast %13 : vector<8x16x1xf32> to vector<8x16x128xf32>
    %42 = arith.mulf %40, %41 : vector<8x16x128xf32>
    %cst_22 = arith.constant 0.000000e+00 : f32
    %43 = vector.broadcast %cst_22 : f32 to vector<8x16x128xf32>
    %44 = arith.maximumf %42, %43 : vector<8x16x128xf32>
    %c0_23 = arith.constant 0 : index
    %c0_24 = arith.constant 0 : index
    %c0_25 = arith.constant 0 : index
    %45 = vector.load %arg5[%c0_23, %c0_24, %c0_25] : memref<8x16x128xf32, #tpu.memory_space<vmem>>, vector<8x16x128xf32>
    tpu.vector_store %arg5[%c0_23, %c0_24, %c0_25], %44 {strides = array<i32>} : memref<8x16x128xf32, #tpu.memory_space<vmem>>, vector<8x16x128xf32>,
    return
  }
  func.func @transform_0(%arg0: i32) -> (i32, i32, i32) {
    %c0_i32 = arith.constant 0 : i32
    %c0_i32_0 = arith.constant 0 : i32
    %c0_i32_1 = arith.constant 0 : i32
    return %arg0, %c0_i32, %c0_i32_0 : i32, i32, i32
  }
  func.func @transform_1(%arg0: i32) -> (i32, i32, i32) {
    %c0_i32 = arith.constant 0 : i32
    %c0_i32_0 = arith.constant 0 : i32
    %c0_i32_1 = arith.constant 0 : i32
    return %arg0, %c0_i32, %c0_i32_0 : i32, i32, i32
  }
  func.func @transform_2(%arg0: i32) -> (i32, i32, i32) {
    %c0_i32 = arith.constant 0 : i32
    %c0_i32_0 = arith.constant 0 : i32
    %c0_i32_1 = arith.constant 0 : i32
    %c0_i32_2 = arith.constant 0 : i32
    return %c0_i32, %c0_i32_0, %c0_i32_1 : i32, i32, i32
  }
  func.func @transform_3(%arg0: i32) -> (i32, i32, i32) {
    %c0_i32 = arith.constant 0 : i32
    %c0_i32_0 = arith.constant 0 : i32
    %c0_i32_1 = arith.constant 0 : i32
    %c0_i32_2 = arith.constant 0 : i32
    return %c0_i32, %c0_i32_0, %c0_i32_1 : i32, i32, i32
  }
  func.func @transform_4(%arg0: i32) -> (i32, i32, i32) {
    %c0_i32 = arith.constant 0 : i32
    %c0_i32_0 = arith.constant 0 : i32
    %c0_i32_1 = arith.constant 0 : i32
    return %arg0, %c0_i32, %c0_i32_0 : i32, i32, i32
  }
}

</mosaic_0001>

<bundles_post_ra>
// kernel: tpu_custom_call.1
= control target key start
LH: loop header
LB: loop body
LE: loop exit
PB: predicated region body
PF: predicated region fallthrough
CT: control target
= control target key end

     0   :  { %s2698_s0 = inlined_call_operand.hbm [shape: bf16[16,16,16], index: 0, kind: input, shape index: {}]   ;;  %s2699_s1 = inlined_call_operand.hbm [shape: f32[16,16,128], index: 1, kind: input, shape index: {}]   ;;  %s2700_s2 = inlined_call_operand.hbm [shape: f32[2,128,128], index: 2, kind: input, shape index: {}]   ;;  %s2701_s3 = inlined_call_operand.vmem [shape: f32[2,1,128], index: 3, kind: input, shape index: {}]   ;;  %s2702_s4 = inlined_call_operand.hbm [shape: f32[16,16,128], index: 4, kind: output, shape index: {}]  }
   0x1   :  { %2706 = sst [smem:[#allocation15_spill]] %s2698_s0 }
   0x2   :  { %2707 = sst [smem:[#allocation16_spill]] %s2700_s2 }
   0x3   :  { %9 = vsyncpa [#allocation3], 0 }
   0x4   :  { %11 = vsyncpa [#allocation3 + $0x1], 0 }
   0x5   :  { %12 = vsyncpa [#allocation6], 0 }
   0x6   :  { %14 = vsyncpa [#allocation6 + $0x1], 0 }
   0x7   :  { %15 = vsyncpa [#allocation4], 0 }
   0x8   :  { %17 = vsyncpa [#allocation4 + $0x1], 0  ;;  %s1904_s15 = smov 0   ;;  %s1906_s16 = smov 0  }
   0x9   :  { %s1908_s17 = smov 0   ;;  %s1910_s18 = smov 0  }
   0xa LB: > { %2708 = sst [smem:[#allocation13_spill]] %s1865_s17  ;;  %s1925_s19 = sadd.s32 4294967295, %s1869_s18   ;;  %s1869_s18 = sphi %s1910_s18, %s2756_s18   ;;  %s1865_s17 = sphi %s1908_s17, %s2753_s17   ;;  %s1861_s16 = sphi %s1906_s16, %s2755_s16   ;;  %s1857_s15 = sphi %s1904_s15, %s2754_s15  }
   0xb   : > { %s1467_s20 = sadd.s32 4294967294, %s1869_s18   ;;  %p43_p0 = scmp.ne.s32.totalorder %s1861_s16, %s1857_s15 }
   0xc   : > { %p44_p1 = scmp.eq.s32.totalorder %s1925_s19, 0  ;;  %p135_p2 = scmp.eq.s32.totalorder %s1925_s19, 1 }
   0xd   : > { %p141_p3 = scmp.eq.s32.totalorder %s1467_s20, 1  ;;  %p1468_p5 = scmp.ge.s32.totalorder %s1869_s18, 1 }
   0xe   : > { %p1934_p4 = por %p44_p1, %p43_p0  ;;  %p148_p7 = scmp.lt.s32.totalorder %s1869_s18, 3 }
   0xf   : > { %p1939_p6 = por %p141_p3, %p43_p0  ;;  %s2711_s2 = sld [smem:[#allocation16_spill]] }
  0x10   : > { %p1947_p8 = pnand %p1468_p5, %p148_p7  ;;  %s1871_s27 = smov [#allocation7]  }
  0x11   : > { %s161_s28 = sshll.u32 %s1871_s27, 4  ;;  %s1957_s29 = sadd.s32 1, %s1869_s18   ;;  %s162_s28 = int_to_ptr.vmem [resolvable:$true] %s161_s28 }
  0x12   : > { %p1612_p9 = pneg %p1947_p8  ;;  %s2703_s30 = smov 128  }
  0x13   : > { %s2704_s5 = smov 8   ;;  %s27_s6 = ssub.s32 %s1869_s18, %s1957_s29 }
  0x14   : > { %p1613_p10 = pnand %p1612_p9, %p44_p1  ;;  %s30_s7 = sadd.s32 1, %s1865_s17 }
  0x15   : > { %s159_s25 = sshll.u32 %s2711_s2, 4  ;;  %p28_p12 = scmp.eq.s32.totalorder %s27_s6, 0  ;;  %s160_s25 = int_to_ptr.hbm [resolvable:$true] %s159_s25 }
  0x16   : > { %1615 = dma.hbm_to_vmem [thread:$0]  (!%p1613_p10), %s160_s25, 4096, %s162_s28, [#allocation6], %s2703_s30, %s2703_s30, %s2704_s5  }
  0x17   : > { %p37_p13 = scmp.ne.s32.totalorder %s1865_s17, %s1861_s16  ;;  %p38_p0 = scmp.eq.s32.totalorder %s1869_s18, 0 }
  0x18   : > { %p1628_p3 = scmp.lt.s32.totalorder %s1869_s18, 2  ;;  %s1979_s10 = sand.u32 1, %s1865_s17  }
  0x19   : > { %s1970_s8 = scalar_select %p28_p12, %s1865_s17, %s30_s7  }
  0x1a   : > { %p39_p5 = por %p38_p0, %p37_p13  ;;  %p1974_p7 = por %p135_p2, %p37_p13 }
  0x1b   : > { %2713 = sst [smem:[#allocation14_spill]] %s1970_s8  ;;  %s1526_s11 = sshll.u32 %s1869_s18, 6 }
  0x1c   : > { %s1471_s12 = sshll.u32 %s1979_s10, 6  ;;  %s2715_s0 = sld [smem:[#allocation15_spill]] }
  0x1d   : > { %s182_s24 = scalar_lea.vmem [#allocation2], %s1471_s12  ;;  %p1988_p2 = pnand %p1628_p3, %p39_p5 }
  0x1e   : > { %s191_s25 = sshll.u32 %s182_s24, 4  ;;  %s201_s28 = sand.u32 1, %s1869_s18   ;;  %s192_s25 = int_to_ptr.vmem [resolvable:$true] %s191_s25 }
  0x1f   : > { %s179_s6 = scalar_lea.sflag [#allocation3], %s1979_s10  ;;  %p1739_p10 = pneg %p1988_p2 }
  0x22   : > { %s188_s20 = scalar_lea.hbm %s2715_s0, %s1526_s11  ;;  %s1742_s13 = scalar_lea.hbm %s2715_s0, 128 }
  0x23   : > { %s189_s23 = sshll.u32 %s188_s20, 4  ;;  %s190_s23 = int_to_ptr.hbm [resolvable:$true] %s189_s23 }
  0x24   : > { %s1735_s7 = sshra.s32 %s190_s23, 4  ;;  %s1736_s7 = int_to_ptr.hbm [resolvable:$true] %s1735_s7 }
  0x25   : > { %s1737_s30 = scalar_lea.hbm %s1736_s7, 64  ;;  %p1743_p0 = scmp.lt.s32.totalorder %s1736_s7, %s2715_s0 }
  0x26   : > { %p1738_p9 = scmp.ne.s32.totalorder %s1736_s7, %s1737_s30  ;;  %p1744_p3 = scmp.lt.s32.totalorder %s1742_s13, %s1737_s30 }
  0x28   : > { %p1740_p12 = pnand %p1739_p10, %p1738_p9  ;;  %p1745_p5 = por %p1744_p3, %p1743_p0 }
  0x2a   : > { %p1741_p13 = pneg %p1740_p12 }
  0x2c   : > { %p1746_p11 = pnand %p1745_p5, %p1741_p13 }
  0x2e   : > { %1749 = shalt.err (!%p1746_p11)
}
  0x2f   : > { %s1874_s24 = smov 64   ;;  %s1875_s5 = smov 4  }
  0x30   : > { %1619 = dma.hbm_to_vmem [thread:$0]  (!%p1988_p2), %s190_s23, 1024, %s192_s25, %s179_s6, %s1874_s24, %s1874_s24, %s1875_s5  }
  0x31   : > { %s1475_s2 = sshll.u32 %s1979_s10, 7  ;;  %s1528_s8 = sshll.u32 %s1869_s18, 7 }
  0x32   : > { %s211_s17 = scalar_lea.hbm %s2699_s1, %s1528_s8  ;;  %s205_s7 = scalar_lea.vmem [#allocation5], %s1475_s2 }
  0x33   : > { %s212_s14 = sshll.u32 %s211_s17, 4  ;;  %s214_s30 = sshll.u32 %s205_s7, 4  ;;  %s213_s14 = int_to_ptr.hbm [resolvable:$true] %s212_s14  ;;  %s215_s30 = int_to_ptr.vmem [resolvable:$true] %s214_s30 }
  0x34   : > { %s202_s13 = scalar_lea.sflag [#allocation6], %s201_s28  ;;  %s1765_s20 = sshra.s32 %s213_s14, 4  ;;  %s1766_s20 = int_to_ptr.hbm [resolvable:$true] %s1765_s20 }
  0x35   : > { %s1767_s0 = scalar_lea.hbm %s1766_s20, 128  ;;  %s1772_s23 = scalar_lea.hbm %s2699_s1, 256 }
  0x36   : > { %p1768_p11 = scmp.ne.s32.totalorder %s1766_s20, %s1767_s0  ;;  %p1773_p13 = scmp.lt.s32.totalorder %s1766_s20, %s2699_s1 }
  0x37   : > { %p1774_p0 = scmp.lt.s32.totalorder %s1772_s23, %s1767_s0 }
  0x38   : > { %p1770_p9 = pnand %p1768_p11, %p1739_p10 }
  0x39   : > { %p1775_p3 = por %p1774_p0, %p1773_p13 }
  0x3a   : > { %p1771_p12 = pneg %p1770_p9 }
  0x3c   : > { %p1776_p5 = pnand %p1775_p3, %p1771_p12 }
  0x3e   : > { %1779 = shalt.err (!%p1776_p5)
}
  0x3f   : > { %s2717_s2 = smov 8   ;;  %s2718_s17 = smov 128  }
  0x40   : > { %1622 = dma.hbm_to_vmem [thread:$0]  (!%p1988_p2), %s213_s14, 2048, %s215_s30, %s202_s13, %s2718_s17, %s2718_s17, %s2717_s2  }
  0x41   : > { %226 = sbr.rel (%p1947_p8) target bundleno = 747 (0x2eb), region = 36  ;;  %s2029_s28 = sand.u32 (!%p1947_p8), 1, %s1861_s16  }
  0x42   : > { %s1480_s6 = sshll.u32 (!%p1947_p8), %s2029_s28, 6  ;;  %s229_s0 = scalar_lea.sflag (!%p1947_p8), [#allocation3], %s2029_s28 }
  0x43   : > { %s2033_s24 = scalar_lea.vmem (!%p1947_p8), [#allocation2], %s1480_s6 }
  0x46   : > { %1840 = dma.done.wait (%p1934_p4), %s229_s0, 1024  }
  0x47   : > { %1842 = vsyncadd (%p1934_p4), %s229_s0, 4294966272  ;;  %s238_s26 = sand.u32 1, %s1925_s19   ;;  %s1481_s27 = sshll.u32 %s2029_s28, 7 }
  0x48   : > { %s239_s11 = scalar_lea.sflag [#allocation6], %s238_s26  ;;  %s2043_s12 = scalar_lea.vmem [#allocation5], %s1481_s27 }
  0x49   : > { %1844 = dma.done.wait (%p1934_p4), %s239_s11, 2048  }
  0x4a   : > { %1846 = vsyncadd (%p1934_p4), %s239_s11, 4294965248 }
  0x4b   : > { %1848 = dma.done.wait (%p44_p1), [#allocation6], 4096  }
  0x4c   : > { %1850 = vsyncadd (%p44_p1), [#allocation6], 4294963200  ;;  %v313_v0 = vlaneseq  ;;  %v630_v4 = vld [vmem:[%s2043_s12 + $0x8] sm:$0xff]  ;;  %v629_v5 = vld [vmem:[%s2043_s12] sm:$0xff]  ;;  %v1876_v7 = vmov 0.0   ;;  %vm340_vm1 = vcmask 130048  }
  0x4d   : > { %v1532_v6 = vld [vmem:[%s2033_s24] sm:$0xff]   ;;  %665 = vmatpush.msra.mxu0 %v630_v4  ;;  %v632_v10 = vld [vmem:[%s2043_s12 + $0x18] sm:$0xff]  ;;  %v631_v11 = vld [vmem:[%s2043_s12 + $0x10] sm:$0xff]  ;;  %s2616_s13 = scalar_lea.vmem [#allocation8], %s1481_s27  ;;  %s1530_s20 = sshll.u32 %s1925_s19, 7 }
  0x4e   : > { %v314_v1 = vshrl.u32 %v313_v0, 7  ;;  %v317_v2 = vand.u32 127, %v313_v0  ;;  %v1533_v9 = vunpack.c.l.bf16 %v1532_v6  ;;  %v1563_v12 = vld [vmem:[%s2033_s24 + $0x8] sm:$0xff]   ;;  %694 = vmatpush.msra.mxu2 %v632_v10  ;;  %v636_v16 = vld [vmem:[%s2043_s12 + $0x38] sm:$0xff]  ;;  %v635_v17 = vld [vmem:[%s2043_s12 + $0x30] sm:$0xff]  ;;  %v1534_v23 = vunpack.c.h.bf16 %v1532_v6  ;;  %s1358_s23 = scalar_lea.hbm %s2702_s4, %s1530_s20  ;;  %s1359_s25 = sshll.u32 %s2616_s13, 4  ;;  %s1360_s25 = int_to_ptr.vmem [resolvable:$true] %s1359_s25 }
  0x4f   : > { %v1537_v13 = vunpack.c.l.bf16 %v1563_v12  ;;  %v634_v14 = vld [vmem:[%s2043_s12 + $0x28] sm:$0xff]  ;;  %666 = vmatpush.msra.mxu0 %v629_v5  ;;  %v1565_v18 = vld [vmem:[%s2033_s24 + $0x18] sm:$0xff]   ;;  %v633_v20 = vld [vmem:[%s2043_s12 + $0x20] sm:$0xff]  ;;  %752 = vmatpush.msra.mxu3 %v636_v16  ;;  %v1538_v26 = vunpack.c.h.bf16 %v1563_v12  ;;  %s1361_s8 = sshll.u32 %s1358_s23, 4  ;;  %s1346_s2 = scalar_lea.sflag [#allocation4], %s2029_s28  ;;  %s1362_s8 = int_to_ptr.hbm [resolvable:$true] %s1361_s8 }
  0x50   : > { %vm318_vm0 = vcmp.eq.s32.totalorder %v314_v1, %v317_v2  ;;  %v315_v3 = vadd.s32 8, %v314_v1  ;;  %695 = vmatpush.msra.mxu2 %v631_v11  ;;  %v1545_v21 = vunpack.c.l.bf16 %v1565_v18  ;;  %v638_v22 = vld [vmem:[%s2043_s12 + $0x48] sm:$0xff]  ;;  %v637_v28 = vld [vmem:[%s2043_s12 + $0x40] sm:$0xff]  ;;  %v640_v29 = vld [vmem:[%s2043_s12 + $0x58] sm:$0xff]  ;;  %v1546_v33 = vunpack.c.h.bf16 %v1565_v18  ;;  %s1809_s19 = sshra.s32 %s1362_s8, 4  ;;  %s1810_s19 = int_to_ptr.hbm [resolvable:$true] %s1809_s19 }
  0x51   : > { %v2056_v8 = vsel %vm318_vm0, 1.0, %v1876_v7  ;;  %v642_v24 = vld [vmem:[%s2043_s12 + $0x68] sm:$0xff]  ;;  %753 = vmatpush.msra.mxu3 %v635_v17  ;;  %v1564_v30 = vld [vmem:[%s2033_s24 + $0x10] sm:$0xff]   ;;  %781 = vmatpush.msrb.mxu0 %v638_v22  ;;  %v641_v31 = vld [vmem:[%s2043_s12 + $0x60] sm:$0xff]  ;;  %s1811_s17 = scalar_lea.hbm %s1810_s19, 128  ;;  %p1816_p2 = scmp.lt.s32.totalorder %s1810_s19, %s2702_s4 }
  0x52   : > { %v2063_v15 = vadd.f32 %v1533_v9, %v2056_v8  ;;  %vm319_vm2 = vcmp.eq.s32.totalorder %v315_v3, %v317_v2  ;;  %v2069_v19 = vadd.f32 %v1537_v13, %v2056_v8  ;;  %723 = vmatpush.msrb.mxu2 %v634_v14  ;;  %v2081_v27 = vadd.f32 %v1545_v21, %v2056_v8  ;;  %v639_v34 = vld [vmem:[%s2043_s12 + $0x50] sm:$0xff]  ;;  %v1566_v37 = vld [vmem:[%s2033_s24 + $0x20] sm:$0xff]   ;;  %v1567_v43 = vld [vmem:[%s2033_s24 + $0x28] sm:$0xff]   ;;  %p1812_p1 = scmp.ne.s32.totalorder %s1810_s19, %s1811_s17 }
  0x53   : > { %v2076_v25 = vsel %vm319_vm2, 1.0, %v1876_v7  ;;  %v1542_v32 = vunpack.c.h.bf16 %v1564_v30  ;;  %782 = vmatpush.msrb.mxu0 %v637_v28  ;;  %810 = vmatpush.msra.mxu1 %v640_v29  ;;  %v1549_v40 = vunpack.c.l.bf16 %v1566_v37  ;;  %v1541_v41 = vunpack.c.l.bf16 %v1564_v30  ;;  %v644_v44 = vld [vmem:[%s2043_s12 + $0x78] sm:$0xff]  ;;  %v643_v45 = vld [vmem:[%s2043_s12 + $0x70] sm:$0xff]  ;;  %v890_v55 = vld [vmem:[#allocation7 + $0x68] sm:$0xff] }
  0x54   : > { %1486 = vmatmul.msk.f32.vlgmr.msra.gmra.mxu0 %vm340_vm1, %v2063_v15  ;;  %1488 = vmatmul.msk.f32.vlgmr.msra.gmra.mxu2 %vm340_vm1, %v2069_v19  ;;  %v2091_v35 = vadd.f32 %v1534_v23, %v2076_v25  ;;  %v2094_v36 = vadd.f32 %v1538_v26, %v2076_v25  ;;  %v2101_v39 = vadd.f32 %v1546_v33, %v2076_v25  ;;  %v1550_v42 = vunpack.c.h.bf16 %v1566_v37  ;;  %v1569_v49 = vld [vmem:[%s2033_s24 + $0x38] sm:$0xff]   ;;  %v891_v51 = vld [vmem:[#allocation7 + $0x70] sm:$0xff]  ;;  %v889_v59 = vld [vmem:[#allocation7 + $0x60] sm:$0xff]  ;;  %p1813_p4 = pnand %p1812_p1, %p1974_p7 }
  0x55   : > { %724 = vmatpush.msrb.mxu2 %v633_v20  ;;  %1492 = vmatmul.msk.f32.vlgmr.msra.gmra.mxu3 %vm340_vm1, %v2081_v27  ;;  %v2098_v38 = vadd.f32 %v1542_v32, %v2076_v25  ;;  %v1553_v48 = vunpack.c.l.bf16 %v1567_v43  ;;  %v892_v50 = vld [vmem:[#allocation7 + $0x78] sm:$0xff]  ;;  %v1561_v52 = vunpack.c.l.bf16 %v1569_v49  ;;  %v2118_v53 = vadd.f32 %v1549_v40, %v2056_v8  ;;  %v887_v1 = vld [vmem:[#allocation7 + $0x50] sm:$0xff]  ;;  %v886_v3 = vld [vmem:[#allocation7 + $0x48] sm:$0xff] }
  0x56   : > { %811 = vmatpush.msra.mxu1 %v639_v34  ;;  %v350_v47 = vsel %vm340_vm1, %v2094_v36, 0.0  ;;  %868 = vmatpush.msrb.mxu3 %v644_v44  ;;  %v2124_v56 = vadd.f32 %v1541_v41, %v2056_v8  ;;  %v2127_v57 = vadd.f32 %v1550_v42, %v2076_v25  ;;  %v1554_v58 = vunpack.c.h.bf16 %v1567_v43  ;;  %v888_v62 = vld [vmem:[#allocation7 + $0x58] sm:$0xff]  ;;  %v1568_v4 = vld [vmem:[%s2033_s24 + $0x30] sm:$0xff]   ;;  %v885_v5 = vld [vmem:[#allocation7 + $0x40] sm:$0xff]  ;;  %p1814_p8 = pneg %p1813_p4  ;;  %s1815_s24 = scalar_lea.hbm %s2702_s4, 256 }
  0x57   : > { %839 = vmatpush.msra.mxu2 %v642_v24  ;;  %v356_v46 = vsel %vm340_vm1, %v2098_v38, 0.0  ;;  %893 = vmatpush.msra.mxu0 %v892_v50  ;;  %v2121_v54 = vadd.f32 %v1553_v48, %v2056_v8  ;;  %v2132_v60 = vadd.f32 %v1561_v52, %v2056_v8  ;;  %v347_v63 = vsel %vm340_vm1, %v2069_v19, 0.0  ;;  %v884_v9 = vld [vmem:[#allocation7 + $0x38] sm:$0xff]  ;;  %v883_v11 = vld [vmem:[#allocation7 + $0x30] sm:$0xff]  ;;  %v882_v12 = vld [vmem:[#allocation7 + $0x28] sm:$0xff]  ;;  %p1817_p10 = scmp.lt.s32.totalorder %s1815_s24, %s1811_s17 }
  0x58   : > { %357 = vadd.xlane.f32.xlu1 %v356_v46  ;;  %869 = vmatpush.msrb.mxu3 %v643_v45  ;;  %v368_v61 = vsel %vm340_vm1, %v2127_v57, 0.0  ;;  %v2143_v0 = vadd.f32 %v1554_v58, %v2076_v25  ;;  %v1562_v2 = vunpack.c.h.bf16 %v1569_v49  ;;  %v341_v7 = vsel %vm340_vm1, %v2063_v15, 0.0  ;;  %v881_v14 = vld [vmem:[#allocation7 + $0x20] sm:$0xff]  ;;  %v880_v16 = vld [vmem:[#allocation7 + $0x18] sm:$0xff]  ;;  %v879_v18 = vld [vmem:[#allocation7 + $0x10] sm:$0xff] }
  0x59   : > { %840 = vmatpush.msra.mxu2 %v641_v31  ;;  %351 = vadd.xlane.f32.xlu0 %v350_v47  ;;  %v1557_v10 = vunpack.c.l.bf16 %v1568_v4  ;;  %v1558_v17 = vunpack.c.h.bf16 %v1568_v4  ;;  %v878_v20 = vld [vmem:[#allocation7 + $0x8] sm:$0xff]  ;;  %v344_v22 = vsel %vm340_vm1, %v2091_v35, 0.0  ;;  %v353_v23 = vsel %vm340_vm1, %v2124_v56, 0.0  ;;  %p1818_p11 = por %p1817_p10, %p1816_p2 }
  0x5a   : > { %894 = vmatpush.msra.mxu0 %v891_v51  ;;  %1496 = vmatmul.msk.f32.vlgmr.msra.gmra.mxu1 %vm340_vm1, %v2121_v54  ;;  %v2151_v6 = vadd.f32 %v1562_v2, %v2076_v25  ;;  %v365_v24 = vsel %vm340_vm1, %v2118_v53, 0.0  ;;  %v374_v26 = vsel %vm340_vm1, %v2143_v0, 0.0  ;;  %v359_v30 = vsel %vm340_vm1, %v2081_v27, 0.0 }
  0x5b   : > { %v2162_v13 = vadd.f32 %v1557_v10, %v2056_v8  ;;  %v2167_v21 = vadd.f32 %v1558_v17, %v2076_v25  ;;  %v877_v8 = vld [vmem:[#allocation7] sm:$0xff]  ;;  %354 = vadd.xlane.f32.xlu2 %v353_v23  ;;  %v362_v32 = vsel %vm340_vm1, %v2101_v39, 0.0  ;;  %v371_v40 = vsel %vm340_vm1, %v2121_v54, 0.0  ;;  %p1819_p9 = pnand %p1818_p11, %p1814_p8 }
  0x5c   : > { %1487 = vmatmul.msk.f32.gmra.mxu0 %vm340_vm1, %v2091_v35  ;;  %1489 = vmatmul.msk.f32.gmra.mxu2 %vm340_vm1, %v2094_v36  ;;  %v386_v47 = vsel %vm340_vm1, %v2151_v6, 0.0  ;;  %v383_v49 = vsel %vm340_vm1, %v2132_v60, 0.0 }
  0x5d   : > { %1493 = vmatmul.msk.f32.gmra.mxu3 %vm340_vm1, %v2101_v39  ;;  %895 = vmatpush.msra.mxu0 %v890_v55  ;;  %v380_v44 = vsel %vm340_vm1, %v2167_v21, 0.0  ;;  %v377_v45 = vsel %vm340_vm1, %v2162_v13, 0.0 }
  0x5f   : > { %896 = vmatpush.msra.mxu0 %v889_v59 }
  0x60   : > { %369 = vadd.xlane.f32.xlu1 %v368_v61 }
  0x61   : > { %897 = vmatpush.msra.mxu0 %v888_v62  ;;  %348 = vadd.xlane.f32.xlu0 %v347_v63 }
  0x62   : > { %1497 = vmatmul.msk.f32.gmra.mxu1 %vm340_vm1, %v2143_v0 }
  0x63   : > { %898 = vmatpush.msra.mxu0 %v887_v1  ;;  %366 = vadd.xlane.f32.xlu2 %v365_v24 }
  0x64   : > { %1494 = vmatmul.msk.f32.vlgmr.msrb.gmra.mxu0 %vm340_vm1, %v2118_v53  ;;  %1490 = vmatmul.msk.f32.vlgmr.msrb.gmra.mxu2 %vm340_vm1, %v2124_v56 }
  0x65   : > { %1570 = vmatpush.msrb.mxu2 %v892_v50  ;;  %1500 = vmatmul.msk.f32.vlgmr.msrb.gmra.mxu3 %vm340_vm1, %v2132_v60 }
  0x66   : > { %899 = vmatpush.msra.mxu0 %v886_v3 }
  0x67   : > { %1571 = vmatpush.msrb.mxu2 %v891_v51 }
  0x68   : > { %900 = vmatpush.msra.mxu0 %v885_v5  ;;  %342 = vadd.xlane.f32.xlu1 %v341_v7 }
  0x69   : > { %1572 = vmatpush.msrb.mxu2 %v890_v55  ;;  %345 = vadd.xlane.f32.xlu0 %v344_v22 }
  0x6a   : > { %901 = vmatpush.msra.mxu0 %v884_v9 }
  0x6b   : > { %1573 = vmatpush.msrb.mxu2 %v889_v59  ;;  %375 = vadd.xlane.f32.xlu2 %v374_v26 }
  0x6c   : > { %1495 = vmatmul.msk.f32.gmra.mxu0 %vm340_vm1, %v2127_v57  ;;  %1491 = vmatmul.msk.f32.gmra.mxu2 %vm340_vm1, %v2098_v38 }
  0x6d   : > { %1574 = vmatpush.msrb.mxu2 %v888_v62  ;;  %1501 = vmatmul.msk.f32.gmra.mxu3 %vm340_vm1, %v2151_v6 }
  0x6e   : > { %902 = vmatpush.msra.mxu0 %v883_v11 }
  0x6f   : > { %1575 = vmatpush.msrb.mxu2 %v887_v1 }
  0x70   : > { %903 = vmatpush.msra.mxu0 %v882_v12  ;;  %363 = vadd.xlane.f32.xlu1 %v362_v32 }
  0x71   : > { %1576 = vmatpush.msrb.mxu2 %v886_v3  ;;  %372 = vadd.xlane.f32.xlu0 %v371_v40 }
  0x72   : > { %904 = vmatpush.msra.mxu0 %v881_v14 }
  0x73   : > { %1577 = vmatpush.msrb.mxu2 %v885_v5  ;;  %360 = vadd.xlane.f32.xlu2 %v359_v30 }
  0x74   : > { %1498 = vmatmul.msk.f32.vlgmr.msra.gmra.mxu2 %vm340_vm1, %v2162_v13  ;;  %905 = vmatpush.msra.mxu0 %v880_v16 }
  0x75   : > { %1578 = vmatpush.msrb.mxu2 %v884_v9 }
  0x76   : > { %906 = vmatpush.msra.mxu0 %v879_v18 }
  0x77   : > { %1579 = vmatpush.msrb.mxu2 %v883_v11 }
  0x78   : > { %907 = vmatpush.msra.mxu0 %v878_v20  ;;  %378 = vadd.xlane.f32.xlu1 %v377_v45 }
  0x79   : > { %1580 = vmatpush.msrb.mxu2 %v882_v12  ;;  %381 = vadd.xlane.f32.xlu0 %v380_v44 }
  0x7a   : > { %908 = vmatpush.msra.mxu0 %v877_v8 }
  0x7b   : > { %1581 = vmatpush.msrb.mxu2 %v881_v14  ;;  %387 = vadd.xlane.f32.xlu2 %v386_v47 }
  0x7c   : > { %1499 = vmatmul.msk.f32.gmra.mxu2 %vm340_vm1, %v2167_v21 }
  0x7d   : > { %1582 = vmatpush.msrb.mxu2 %v880_v16 }
  0x7f   : > { %1583 = vmatpush.msrb.mxu2 %v879_v18 }
  0x81   : > { %1584 = vmatpush.msrb.mxu2 %v878_v20  ;;  %384 = vadd.xlane.f32.xlu0 %v383_v49 }
  0x83   : > { %1585 = vmatpush.msrb.mxu2 %v877_v8 }
  0xcb   : > { %v2193_v55 = vpop.xlane.xlu1 %357 }
  0xcc   : > { %v2195_v58 = vpop.xlane.xlu0 %351 }
  0xcd   : > { %vm439_vm13 = vweird.f32 %v2195_v58 }
  0xce   : > { %v2201_v7 = vpop.xlane.xlu2 %354 }
  0xd1   : > { %v668_v25 = vpop.f32.mrf.mxu0 }
  0xd2   : > { %909 = vmatmul.f32.vlgmr.msra.gmra.mxu0 %v668_v25 }
  0xd3   : > { %v2197_v61 = vpop.xlane.xlu1 %369 }
  0xd4   : > { %v2199_v62 = vpop.xlane.xlu0 %348 }
  0xd5   : > { %vm424_vm11 = vweird.f32 %v2199_v62 }
  0xd6   : > { %v2213_v26 = vpop.xlane.xlu2 %366 }
  0xd7   : > { %v697_v28 = vpop.f32.mrf.mxu2  ;;  %v813_v52 = vpop.f32.mrf.mxu1 }
  0xd8   : > { %v755_v37 = vpop.f32.mrf.mxu3 }
  0xd9   : > { %v671_v29 = vpop.f32.mrf.mxu0 }
  0xda   : > { %912 = vmatmul.f32.gmra.mxu0 %v671_v29 }
  0xdb   : > { %v343_v63 = vpop.xlane.xlu1 %342 }
  0xdc   : > { %v346_v1 = vpop.xlane.xlu0 %345  ;;  %1673 = vrcp.f32 %v343_v63  ;;  %vm394_vm3 = vweird.f32 %v343_v63  ;;  %v400_v18 = vand.u32 2147483648, %v343_v63  ;;  %v398_v25 = vand.u32 2147483647, %v343_v63 }
  0xdd   : > { %1675 = vrcp.f32 %v346_v1  ;;  %vm409_vm5 = vweird.f32 %v346_v1  ;;  %v415_v17 = vand.u32 2147483648, %v346_v1  ;;  %v413_v22 = vand.u32 2147483647, %v346_v1 }
  0xde   : > { %1677 = vrcp.f32 %v2195_v58  ;;  %v401_v32 = vor.u32 1.1754944e-38, %v400_v18  ;;  %vm399_vm10 = vcmp.eq.f32.partialorder %v398_v25, 8.507059e+37 }
  0xdf   : > { %v700_v31 = vpop.f32.mrf.mxu2  ;;  %v816_v59 = vpop.f32.mrf.mxu1  ;;  %1679 = vrcp.f32 %v2199_v62  ;;  %vm414_vm9 = vcmp.eq.f32.partialorder %v413_v22, 8.507059e+37 }
  0xe0   : > { %v758_v42 = vpop.f32.mrf.mxu3  ;;  %1681 = vrcp.f32 %v2193_v55 }
  0xe1   : > { %v784_v48 = vpop.f32.mrf.mxu0  ;;  %1683 = vrcp.f32 %v2201_v7 }
  0xe2   : > { %915 = vmatmul.f32.gmra.mxu0 %v697_v28  ;;  %v1674_v2 = vpop.eup %1673  ;;  %v2218_v28 = vld [vmem:[%s2701_s3] ss:$0 sm:$0xff] }
  0xe3   : > { %v1676_v3 = vpop.eup %1675  ;;  %v390_v4 = vmul.f32 %v1674_v2, %v343_v63  ;;  %vm395_vm4 = vweird.f32 %v1674_v2  ;;  %v430_v63 = vand.u32 2147483648, %v2199_v62 }
  0xe4   : > { %v405_v5 = vmul.f32 %v1676_v3, %v346_v1  ;;  %vm410_vm6 = vweird.f32 %v1676_v3  ;;  %v2205_v14 = vpop.eup %1677  ;;  %vm2209_vm7 = vmor %vm394_vm3, %vm395_vm4  ;;  %vm454_vm4 = vweird.f32 %v2201_v7 }
  0xe5   : > { %v391_v9 = vsub.f32 1.0, %v390_v4  ;;  %v2207_v20 = vpop.eup %1679  ;;  %vm411_vm8 = vmor %vm409_vm5, %vm410_vm6  ;;  %v435_v29 = vmul.f32 %v2205_v14, %v2195_v58  ;;  %vm440_vm14 = vweird.f32 %v2205_v14  ;;  %vm469_vm6 = vweird.f32 %v2193_v55 }
  0xe6   : > { %v406_v10 = vsub.f32 1.0, %v405_v5  ;;  %v420_v30 = vmul.f32 %v2207_v20, %v2199_v62  ;;  %vm425_vm12 = vweird.f32 %v2207_v20  ;;  %vm441_vm0 = vmor %vm439_vm13, %vm440_vm14  ;;  %v2321_v5 = vpop.xlane.xlu0 %372 }
  0xe7   : > { %v726_v33 = vpop.f32.mrf.mxu2  ;;  %v392_v11 = vmul.f32 %v1674_v2, %v391_v9  ;;  %vm2251_vm15 = vmor %vm424_vm11, %vm425_vm12  ;;  %v428_v9 = vand.u32 2147483647, %v2199_v62 }
  0xe8   : > { %v871_v46 = vpop.f32.mrf.mxu3  ;;  %v407_v12 = vmul.f32 %v1676_v3, %v406_v10  ;;  %v421_v44 = vsub.f32 1.0, %v420_v30 }
  0xe9   : > { %v787_v51 = vpop.f32.mrf.mxu0  ;;  %v393_v23 = vadd.f32 %v1674_v2, %v392_v11  ;;  %v443_v11 = vand.u32 2147483647, %v2195_v58  ;;  %vm429_vm2 = vcmp.eq.f32.partialorder %v428_v9, 8.507059e+37 }
  0xea   : > { %918 = vmatmul.f32.gmra.mxu0 %v700_v31  ;;  %v408_v8 = vadd.f32 %v1676_v3, %v407_v12  ;;  %v416_v31 = vor.u32 1.1754944e-38, %v415_v17  ;;  %v431_v17 = vor.u32 1.1754944e-38, %v430_v63 }
  0xeb   : > { %vm444_vm3 = vcmp.eq.f32.partialorder %v443_v11, 8.507059e+37 }
  0xef   : > { %v729_v34 = vpop.f32.mrf.mxu2 }
  0xf0   : > { %v874_v50 = vpop.f32.mrf.mxu3 }
  0xf2   : > { %921 = vmatmul.f32.gmra.mxu0 %v726_v33  ;;  %v412_v33 = vsel %vm411_vm8, %v1676_v3, %v408_v8 }
  0xf7   : > { %v842_v41 = vpop.f32.mrf.mxu2 }
  0xf8   : > { %945 = vmatmul.f32.vlgmr.msrb.gmra.mxu2 %v842_v41  ;;  %v2227_v41 = vsel %vm414_vm9, %v416_v31, %v412_v33 }
  0xfa   : > { %924 = vmatmul.f32.gmra.mxu0 %v729_v34  ;;  %v397_v34 = vsel %vm2209_vm7, %v1674_v2, %v393_v23  ;;  %v445_v2 = vand.u32 2147483648, %v2195_v58 }
  0xfc   : > { %v446_v18 = vor.u32 1.1754944e-38, %v445_v2 }
  0xff   : > { %v845_v43 = vpop.f32.mrf.mxu2 }
 0x100   : > { %948 = vmatmul.f32.gmra.mxu2 %v845_v43  ;;  %v436_v43 = vsub.f32 1.0, %v435_v29 }
 0x102   : > { %927 = vmatmul.f32.gmra.mxu0 %v755_v37  ;;  %v437_v49 = vmul.f32 %v2205_v14, %v436_v43  ;;  %v460_v43 = vand.u32 2147483648, %v2201_v7 }
 0x104   : > { %v438_v10 = vadd.f32 %v2205_v14, %v437_v49  ;;  %v461_v63 = vor.u32 1.1754944e-38, %v460_v43 }
 0x106   : > { %v442_v8 = vsel %vm441_vm0, %v2205_v14, %v438_v10 }
 0x107   : > { %v2275_v24 = vsel %vm444_vm3, %v446_v18, %v442_v8 }
 0x108   : > { %951 = vmatmul.f32.gmra.mxu2 %v871_v46 }
 0x10a   : > { %930 = vmatmul.f32.gmra.mxu0 %v758_v42  ;;  %v2229_v42 = vsel %vm399_vm10, %v401_v32, %v397_v34 }
 0x110   : > { %954 = vmatmul.f32.gmra.mxu2 %v874_v50  ;;  %v422_v50 = vmul.f32 %v2207_v20, %v421_v44 }
 0x112   : > { %933 = vmatmul.f32.gmra.mxu0 %v784_v48  ;;  %v2236_v48 = vpop.xlane.xlu2 %375  ;;  %v423_v4 = vadd.f32 %v2207_v20, %v422_v50  ;;  %v473_v50 = vand.u32 2147483647, %v2193_v55 }
 0x114   : > { %v427_v62 = vsel %vm2251_vm15, %v2207_v20, %v423_v4  ;;  %v2279_v20 = vpop.xlane.xlu1 %363  ;;  %vm474_vm11 = vcmp.eq.f32.partialorder %v473_v50, 8.507059e+37 }
 0x115   : > { %v2273_v23 = vsel %vm429_vm2, %v431_v17, %v427_v62  ;;  %vm499_vm14 = vweird.f32 %v2279_v20  ;;  %v503_v43 = vand.u32 2147483647, %v2279_v20 }
 0x11a   : > { %936 = vmatmul.f32.gmra.mxu0 %v787_v51 }
 0x122   : > { %939 = vmatmul.f32.gmra.mxu0 %v813_v52 }
 0x12a   : > { %942 = vmatmul.f32.gmra.mxu0 %v816_v59  ;;  %v2244_v59 = vpop.eup %1681 }
 0x12b   : > { %v2248_v3 = vpop.eup %1683  ;;  %v465_v12 = vmul.f32 %v2244_v59, %v2193_v55  ;;  %vm470_vm7 = vweird.f32 %v2244_v59 }
 0x12c   : > { %vm455_vm5 = vweird.f32 %v2248_v3  ;;  %vm471_vm9 = vmor %vm469_vm6, %vm470_vm7  ;;  %vm514_vm6 = vweird.f32 %v2213_v26 }
 0x12d   : > { %v466_v29 = vsub.f32 1.0, %v465_v12  ;;  %vm2297_vm8 = vmor %vm454_vm4, %vm455_vm5  ;;  %vm504_vm4 = vcmp.eq.f32.partialorder %v503_v43, 8.507059e+37  ;;  %vm529_vm5 = vweird.f32 %v2197_v61 }
 0x12f   : > { %v467_v33 = vmul.f32 %v2244_v59, %v466_v29 }
 0x131   : > { %v468_v49 = vadd.f32 %v2244_v59, %v467_v33 }
 0x133   : > { %v472_v2 = vsel %vm471_vm9, %v2244_v59, %v468_v49 }
 0x14f   : > { %v910_v16 = vpop.f32.mrf.mxu0 }
 0x150   : > { %v962_v37 = vadd.f32 %v2218_v28, %v910_v16  ;;  %v450_v16 = vmul.f32 %v2248_v3, %v2201_v7 }
 0x152   : > { %v978_v47 = vmul.f32 %v962_v37, %v2229_v42  ;;  %v451_v22 = vsub.f32 1.0, %v450_v16 }
 0x154   : > { %v994_v52 = vmax.f32 %v978_v47, 0.0  ;;  %v452_v32 = vmul.f32 %v2248_v3, %v451_v22  ;;  %v458_v47 = vand.u32 2147483647, %v2201_v7 }
 0x156   : > { %vm459_vm10 = vcmp.eq.f32.partialorder %v458_v47, 8.507059e+37 }
 0x157   : > { %v913_v40 = vpop.f32.mrf.mxu0 }
 0x158   : > { %v963_v45 = vadd.f32 %v2218_v28, %v913_v40  ;;  %v453_v40 = vadd.f32 %v2248_v3, %v452_v32  ;;  %v2354_v32 = vpop.xlane.xlu0 %381 }
 0x159   : > { %vm589_vm9 = vweird.f32 %v2354_v32  ;;  %v593_v43 = vand.u32 2147483647, %v2354_v32 }
 0x15a   : > { %v979_v46 = vmul.f32 %v963_v45, %v2227_v41  ;;  %v475_v45 = vand.u32 2147483648, %v2193_v55  ;;  %v457_v7 = vsel %vm2297_vm8, %v2248_v3, %v453_v40 }
 0x15b   : > { %v2323_v9 = vsel %vm459_vm10, %v461_v63, %v457_v7 }
 0x15c   : > { %v995_v51 = vmax.f32 %v979_v46, 0.0 }
 0x15e   : > { %1024 = vmatpush.msrb.mxu1 %v995_v51 }
 0x15f   : > { %v916_v1 = vpop.f32.mrf.mxu0 }
 0x160   : > { %1025 = vmatpush.msrb.mxu1 %v994_v52  ;;  %v964_v58 = vadd.f32 %v2218_v28, %v916_v1  ;;  %v476_v1 = vor.u32 1.1754944e-38, %v475_v45  ;;  %v2419_v46 = vpop.xlane.xlu0 %384 }
 0x161   : > { %1502 = vmatmul.msk.f32.vlgmr.msrb.gmra.mxu1 %vm340_vm1, %v2063_v15  ;;  %v2270_v15 = vpop.xlane.xlu2 %360 }
 0x162   : > { %1685 = vrcp.f32 %v2270_v15  ;;  %v980_v14 = vmul.f32 %v964_v58, %v2273_v23  ;;  %v2325_v10 = vsel %vm474_vm11, %v476_v1, %v472_v2  ;;  %vm484_vm12 = vweird.f32 %v2270_v15 }
 0x163   : > { %1687 = vrcp.f32 %v2279_v20  ;;  %v488_v29 = vand.u32 2147483647, %v2270_v15 }
 0x164   : > { %1689 = vrcp.f32 %v2197_v61 }
 0x165   : > { %1691 = vrcp.f32 %v2213_v26  ;;  %vm489_vm2 = vcmp.eq.f32.partialorder %v488_v29, 8.507059e+37 }
 0x166   : > { %1693 = vrcp.f32 %v2236_v48 }
 0x167   : > { %v919_v25 = vpop.f32.mrf.mxu0  ;;  %1695 = vrcp.f32 %v2354_v32 }
 0x168   : > { %v965_v30 = vadd.f32 %v2218_v28, %v919_v25  ;;  %v2290_v37 = vpop.eup %1685  ;;  %v490_v25 = vand.u32 2147483648, %v2270_v15 }
 0x169   : > { %1503 = vmatmul.msk.f32.gmra.mxu1 %vm340_vm1, %v2091_v35  ;;  %v996_v35 = vmax.f32 %v980_v14, 0.0  ;;  %v2304_v51 = vpop.eup %1687  ;;  %v480_v52 = vmul.f32 %v2290_v37, %v2270_v15  ;;  %vm485_vm13 = vweird.f32 %v2290_v37 }
 0x16a   : > { %v981_v31 = vmul.f32 %v965_v30, %v2275_v24  ;;  %v495_v4 = vmul.f32 %v2304_v51, %v2279_v20  ;;  %v2327_v11 = vpop.eup %1689  ;;  %vm2349_vm15 = vmor %vm484_vm12, %vm485_vm13  ;;  %vm500_vm0 = vweird.f32 %v2304_v51  ;;  %v491_v15 = vor.u32 1.1754944e-38, %v490_v25 }
 0x16b   : > { %v2335_v62 = vpop.eup %1691  ;;  %v525_v8 = vmul.f32 %v2327_v11, %v2197_v61  ;;  %vm2367_vm3 = vmor %vm499_vm14, %vm500_vm0  ;;  %vm530_vm7 = vweird.f32 %v2327_v11  ;;  %vm594_vm0 = vcmp.eq.f32.partialorder %v593_v43, 8.507059e+37  ;;  %v610_v43 = vand.u32 2147483648, %v2419_v46 }
 0x16c   : > { %v997_v34 = vmax.f32 %v981_v31, 0.0  ;;  %v496_v12 = vsub.f32 1.0, %v495_v4  ;;  %v510_v30 = vmul.f32 %v2335_v62, %v2213_v26  ;;  %v2371_v50 = vpop.eup %1693  ;;  %v535_v4 = vand.u32 2147483648, %v2197_v61 }
 0x16d   : > { %v526_v33 = vsub.f32 1.0, %v525_v8  ;;  %v2385_v2 = vmul.f32 %v2371_v50, %v2236_v48  ;;  %vm515_vm8 = vweird.f32 %v2335_v62  ;;  %v595_v31 = vand.u32 2147483648, %v2354_v32 }
 0x16e   : > { %1047 = vmatpush.msra.mxu2 %v997_v34  ;;  %v497_v22 = vmul.f32 %v2304_v51, %v496_v12  ;;  %v511_v47 = vsub.f32 1.0, %v510_v30 }
 0x16f   : > { %v922_v44 = vpop.f32.mrf.mxu0 }
 0x170   : > { %1048 = vmatpush.msra.mxu2 %v996_v35  ;;  %v966_v55 = vadd.f32 %v2218_v28, %v922_v44  ;;  %v505_v35 = vand.u32 2147483648, %v2279_v20  ;;  %v498_v40 = vadd.f32 %v2304_v51, %v497_v22  ;;  %v379_v44 = vpop.xlane.xlu1 %378  ;;  %v1696_v20 = vpop.eup %1695  ;;  %v512_v1 = vmul.f32 %v2335_v62, %v511_v47 }
 0x171   : > { %1504 = vmatmul.msk.f32.vlgmr.msra.gmra.mxu2 %vm340_vm1, %v2069_v19  ;;  %v481_v19 = vsub.f32 1.0, %v480_v52  ;;  %1697 = vrcp.f32 %v379_v44  ;;  %v527_v52 = vmul.f32 %v2327_v11, %v526_v33  ;;  %vm574_vm10 = vweird.f32 %v379_v44  ;;  %v2404_v33 = vpop.xlane.xlu2 %387 }
 0x172   : > { %v982_v17 = vmul.f32 %v966_v55, %v2323_v9  ;;  %1699 = vrcp.f32 %v2321_v5  ;;  %vm590_vm13 = vweird.f32 %v1696_v20 }
 0x173   : > { %v482_v16 = vmul.f32 %v2290_v37, %v481_v19  ;;  %v585_v19 = vmul.f32 %v1696_v20, %v2354_v32  ;;  %v2393_v12 = vadd.f32 %v2327_v11, %v527_v52  ;;  %vm2412_vm14 = vmor %vm589_vm9, %vm590_vm13  ;;  %1701 = vrcp.f32 %v2404_v33 }
 0x174   : > { %v998_v14 = vmax.f32 %v982_v17, 0.0  ;;  %v520_v32 = vand.u32 2147483648, %v2213_v26  ;;  %1703 = vrcp.f32 %v2419_v46 }
 0x177   : > { %v925_v3 = vpop.f32.mrf.mxu0  ;;  %v1698_v55 = vpop.eup %1697 }
 0x178   : > { %v967_v59 = vadd.f32 %v2218_v28, %v925_v3  ;;  %v570_v8 = vmul.f32 %v1698_v55, %v379_v44  ;;  %vm575_vm11 = vweird.f32 %v1698_v55 }
 0x179   : > { %1505 = vmatmul.msk.f32.gmra.mxu2 %vm340_vm1, %v2094_v36  ;;  %v483_v36 = vadd.f32 %v2290_v37, %v482_v16  ;;  %v580_v16 = vand.u32 2147483648, %v379_v44  ;;  %vm2406_vm12 = vmor %vm574_vm10, %vm575_vm11 }
 0x17a   : > { %v983_v18 = vmul.f32 %v967_v59, %v2325_v10  ;;  %v571_v25 = vsub.f32 1.0, %v570_v8  ;;  %v536_v8 = vor.u32 1.1754944e-38, %v535_v4 }
 0x17b   : > { %v487_v45 = vsel %vm2349_vm15, %v2290_v37, %v483_v36  ;;  %v946_v49 = vpop.f32.mrf.mxu2  ;;  %v506_v37 = vor.u32 1.1754944e-38, %v505_v35  ;;  %v578_v36 = vand.u32 2147483647, %v379_v44  ;;  %v596_v44 = vor.u32 1.1754944e-38, %v595_v31 }
 0x17c   : > { %v999_v58 = vmax.f32 %v983_v18, 0.0  ;;  %v2375_v63 = vsel %vm489_vm2, %v491_v15, %v487_v45  ;;  %v586_v18 = vsub.f32 1.0, %v585_v19  ;;  %v533_v19 = vand.u32 2147483647, %v2197_v61  ;;  %vm2437_vm2 = vmor %vm529_vm5, %vm530_vm7 }
 0x17d   : > { %vm2421_vm15 = vcmp.eq.f32.partialorder %v578_v36, 8.507059e+37  ;;  %v532_v36 = vsel %vm2437_vm2, %v2327_v11, %v2393_v12  ;;  %v625_v11 = vand.u32 2147483648, %v2404_v33 }
 0x17e   : > { %1070 = vmatpush.msra.mxu3 %v999_v58  ;;  %v587_v22 = vmul.f32 %v1696_v20, %v586_v18  ;;  %v556_v18 = vsub.f32 1.0, %v2385_v2 }
 0x17f   : > { %v928_v34 = vpop.f32.mrf.mxu0 }
 0x180   : > { %1071 = vmatpush.msra.mxu3 %v998_v14  ;;  %v968_v7 = vadd.f32 %v2218_v28, %v928_v34  ;;  %v581_v14 = vor.u32 1.1754944e-38, %v580_v16  ;;  %v572_v34 = vmul.f32 %v1698_v55, %v571_v25  ;;  %v588_v15 = vadd.f32 %v1696_v20, %v587_v22 }
 0x181   : > { %1506 = vmatmul.msk.f32.vlgmr.msra.gmra.mxu3 %vm340_vm1, %v2124_v56  ;;  %v502_v56 = vsel %vm2367_vm3, %v2304_v51, %v498_v40  ;;  %vm2451_vm3 = vmor %vm514_vm6, %vm515_vm8  ;;  %v521_v25 = vor.u32 1.1754944e-38, %v520_v32  ;;  %vm619_vm6 = vweird.f32 %v2404_v33  ;;  %vm604_vm8 = vweird.f32 %v2419_v46 }
 0x182   : > { %v984_v3 = vmul.f32 %v968_v7, %v2375_v63  ;;  %v2390_v51 = vsel %vm504_vm4, %v506_v37, %v502_v56  ;;  %v573_v47 = vadd.f32 %v1698_v55, %v572_v34  ;;  %v974_v7 = vadd.f32 %v2218_v28, %v946_v49 }
 0x183   : > { %v949_v29 = vpop.f32.mrf.mxu2  ;;  %v592_v37 = vsel %vm2412_vm14, %v1696_v20, %v588_v15  ;;  %vm2468_vm4 = vcmp.eq.f32.partialorder %v533_v19, 8.507059e+37  ;;  %v623_v34 = vand.u32 2147483647, %v2404_v33  ;;  %v608_v40 = vand.u32 2147483647, %v2419_v46  ;;  %v2503_v19 = vld [vmem:[#allocation7 + $0xf8] sm:$0xff] }
 0x184   : > { %v1000_v30 = vmax.f32 %v984_v3, 0.0  ;;  %v975_v45 = vadd.f32 %v2218_v28, %v949_v29  ;;  %v513_v3 = vadd.f32 %v2335_v62, %v512_v1  ;;  %v577_v20 = vsel %vm2406_vm12, %v1698_v55, %v573_v47 }
 0x185   : > { %v2443_v16 = vsel %vm594_vm0, %v596_v44, %v592_v37  ;;  %v2459_v61 = vsel %vm2421_vm15, %v581_v14, %v577_v20  ;;  %v2492_v37 = vsel %vm2468_vm4, %v536_v8, %v532_v36  ;;  %vm624_vm11 = vcmp.eq.f32.partialorder %v623_v34, 8.507059e+37 }
 0x186   : > { %v991_v55 = vmul.f32 %v975_v45, %v2443_v16  ;;  %v517_v2 = vsel %vm2451_vm3, %v2335_v62, %v513_v3  ;;  %v2505_v3 = vld [vmem:[#allocation7 + $0xf0] sm:$0xff]  ;;  %vm2516_vm13 = vcmp.eq.f32.partialorder %v608_v40, 8.507059e+37  ;;  %vm559_vm14 = vweird.f32 %v2236_v48 }
 0x187   : > { %v931_v59 = vpop.f32.mrf.mxu0  ;;  %vm560_vm15 = vweird.f32 %v2371_v50  ;;  %vm544_vm0 = vweird.f32 %v2321_v5  ;;  %v550_v34 = vand.u32 2147483648, %v2321_v5  ;;  %v1205_v40 = vld [vmem:[#allocation7 + $0xd0] sm:$0xff] }
 0x188   : > { %v969_v17 = vadd.f32 %v2218_v28, %v931_v59  ;;  %v518_v59 = vand.u32 2147483647, %v2213_v26  ;;  %v1007_v29 = vmax.f32 %v991_v55, 0.0  ;;  %vm2562_vm3 = vmor %vm559_vm14, %vm560_vm15 }
 0x189   : > { %1507 = vmatmul.msk.f32.gmra.mxu3 %vm340_vm1, %v2098_v38 }
 0x18a   : > { %v985_v58 = vmul.f32 %v969_v17, %v2390_v51  ;;  %v2445_v17 = vpop.eup %1699  ;;  %vm519_vm5 = vcmp.eq.f32.partialorder %v518_v59, 8.507059e+37 }
 0x18b   : > { %v952_v22 = vpop.f32.mrf.mxu2  ;;  %v1702_v26 = vpop.eup %1701  ;;  %v2483_v35 = vsel %vm519_vm5, %v521_v25, %v517_v2  ;;  %vm545_vm2 = vweird.f32 %v2445_v17 }
 0x18c   : > { %v1001_v38 = vmax.f32 %v985_v58, 0.0  ;;  %v990_v58 = vmul.f32 %v974_v7, %v2459_v61  ;;  %v1704_v14 = vpop.eup %1703  ;;  %vm620_vm7 = vweird.f32 %v1702_v26  ;;  %vm2572_vm4 = vmor %vm544_vm0, %vm545_vm2 }
 0x18d   : > { %v600_v62 = vmul.f32 %v1704_v14, %v2419_v46  ;;  %vm605_vm9 = vweird.f32 %v1704_v14  ;;  %vm2499_vm10 = vmor %vm619_vm6, %vm620_vm7 }
 0x18e   : > { %1093 = vmatpush.msra.mxu1 %v1001_v38  ;;  %v1006_v4 = vmax.f32 %v990_v58, 0.0  ;;  %v540_v38 = vmul.f32 %v2445_v17, %v2321_v5  ;;  %vm2512_vm12 = vmor %vm604_vm8, %vm605_vm9  ;;  %v2521_v58 = vld [vmem:[#allocation7 + $0xe8] sm:$0xff] }
 0x18f   : > { %v934_v56 = vpop.f32.mrf.mxu0  ;;  %v601_v47 = vsub.f32 1.0, %v600_v62 }
 0x190   : > { %1094 = vmatpush.msra.mxu1 %v1000_v30  ;;  %v615_v30 = vmul.f32 %v1702_v26, %v2404_v33  ;;  %v970_v31 = vadd.f32 %v2218_v28, %v934_v56  ;;  %v541_v7 = vsub.f32 1.0, %v540_v38  ;;  %v626_v56 = vor.u32 1.1754944e-38, %v625_v11  ;;  %v2543_v11 = vld [vmem:[#allocation7 + $0xd8] sm:$0xff] }
 0x191   : > { %1508 = vmatmul.msk.f32.vlgmr.msra.gmra.mxu1 %vm340_vm1, %v2081_v27  ;;  %v602_v49 = vmul.f32 %v1704_v14, %v601_v47  ;;  %v611_v33 = vor.u32 1.1754944e-38, %v610_v43  ;;  %v976_v27 = vadd.f32 %v2218_v28, %v952_v22 }
 0x192   : > { %1162 = vmatpush.msrb.mxu1 %v1007_v29  ;;  %v616_v12 = vsub.f32 1.0, %v615_v30  ;;  %v986_v52 = vmul.f32 %v970_v31, %v2483_v35  ;;  %v557_v29 = vmul.f32 %v2371_v50, %v556_v18  ;;  %v542_v31 = vmul.f32 %v2445_v17, %v541_v7 }
 0x193   : > { %v955_v1 = vpop.f32.mrf.mxu2  ;;  %v603_v36 = vadd.f32 %v1704_v14, %v602_v49  ;;  %v551_v7 = vor.u32 1.1754944e-38, %v550_v34 }
 0x194   : > { %1163 = vmatpush.msrb.mxu1 %v1006_v4  ;;  %v617_v45 = vmul.f32 %v1702_v26, %v616_v12  ;;  %v977_v8 = vadd.f32 %v2218_v28, %v955_v1  ;;  %v2530_v4 = vld [vmem:[#allocation7 + $0xe0] sm:$0xff]  ;;  %v1002_v30 = vmax.f32 %v986_v52, 0.0  ;;  %v558_v62 = vadd.f32 %v2371_v50, %v557_v29  ;;  %v1204_v52 = vld [vmem:[#allocation7 + $0xc8] sm:$0xff] }
 0x195   : > { %v607_v38 = vsel %vm2512_vm12, %v1704_v14, %v603_v36  ;;  %v543_v43 = vadd.f32 %v2445_v17, %v542_v31 }
 0x196   : > { %v618_v20 = vadd.f32 %v1702_v26, %v617_v45  ;;  %1211 = vmatpush.msra.mxu1 %v2503_v19  ;;  %v2541_v18 = vsel %vm2516_vm13, %v611_v33, %v607_v38 }
 0x197   : > { %v937_v15 = vpop.f32.mrf.mxu0  ;;  %v992_v14 = vmul.f32 %v976_v27, %v2541_v18  ;;  %v1198_v27 = vld [vmem:[#allocation7 + $0x98] sm:$0xff] }
 0x198   : > { %v971_v44 = vadd.f32 %v2218_v28, %v937_v15  ;;  %v622_v46 = vsel %vm2499_vm10, %v1702_v26, %v618_v20  ;;  %1212 = vmatpush.msra.mxu1 %v2505_v3  ;;  %v565_v15 = vand.u32 2147483648, %v2236_v48  ;;  %v1202_v20 = vld [vmem:[#allocation7 + $0xb8] sm:$0xff] }
 0x199   : > { %1509 = vmatmul.msk.f32.gmra.mxu1 %vm340_vm1, %v2101_v39  ;;  %v2528_v2 = vsel %vm624_vm11, %v626_v56, %v622_v46  ;;  %v1008_v47 = vmax.f32 %v992_v14, 0.0  ;;  %v1203_v56 = vld [vmem:[#allocation7 + $0xc0] sm:$0xff] }
 0x19a   : > { %v987_v59 = vmul.f32 %v971_v44, %v2492_v37  ;;  %v993_v22 = vmul.f32 %v977_v8, %v2528_v2  ;;  %1213 = vmatpush.msra.mxu1 %v2521_v58  ;;  %v548_v44 = vand.u32 2147483647, %v2321_v5  ;;  %v566_v32 = vor.u32 1.1754944e-38, %v565_v15  ;;  %v1200_v8 = vld [vmem:[#allocation7 + $0xa8] sm:$0xff]  ;;  %v2610_v14 = vld [vmem:[%s2701_s3 + $0x1] ss:$0 sm:$0xff] }
 0x19c   : > { %v1003_v25 = vmax.f32 %v987_v59, 0.0  ;;  %v1009_v12 = vmax.f32 %v993_v22, 0.0  ;;  %1214 = vmatpush.msra.mxu1 %v2530_v4  ;;  %v547_v59 = vsel %vm2572_vm4, %v2445_v17, %v543_v43  ;;  %vm549_vm5 = vcmp.eq.f32.partialorder %v548_v44, 8.507059e+37 }
 0x19d   : > { %v2584_v39 = vsel %vm549_vm5, %v551_v7, %v547_v59 }
 0x19e   : > { %1116 = vmatpush.msrb.mxu2 %v1003_v25  ;;  %1215 = vmatpush.msra.mxu1 %v2543_v11 }
 0x19f   : > { %v940_v26 = vpop.f32.mrf.mxu0 }
 0x1a0   : > { %1117 = vmatpush.msrb.mxu2 %v1002_v30  ;;  %1216 = vmatpush.msra.mxu1 %v1205_v40  ;;  %v972_v5 = vadd.f32 %v2218_v28, %v940_v26 }
 0x1a1   : > { %1510 = vmatmul.msk.f32.vlgmr.msrb.gmra.mxu2 %vm340_vm1, %v2118_v53  ;;  %1514 = vmatmul.msk.f32.vlgmr.msrb.gmra.mxu1 %vm340_vm1, %v2162_v13  ;;  %v563_v53 = vand.u32 2147483647, %v2236_v48  ;;  %v562_v48 = vsel %vm2562_vm3, %v2371_v50, %v558_v62  ;;  %v1201_v50 = vld [vmem:[#allocation7 + $0xb0] sm:$0xff] }
 0x1a2   : > { %1185 = vmatpush.msra.mxu2 %v1009_v12  ;;  %1217 = vmatpush.msra.mxu1 %v1204_v52  ;;  %v988_v17 = vmul.f32 %v972_v5, %v2584_v39 }
 0x1a3   : > { %vm564_vm6 = vcmp.eq.f32.partialorder %v563_v53, 8.507059e+37 }
 0x1a4   : > { %1186 = vmatpush.msra.mxu2 %v1008_v47  ;;  %1218 = vmatpush.msra.mxu1 %v1203_v56  ;;  %v2586_v33 = vsel %vm564_vm6, %v566_v32, %v562_v48  ;;  %v1004_v36 = vmax.f32 %v988_v17, 0.0 }
 0x1a6   : > { %1219 = vmatpush.msra.mxu1 %v1202_v20 }
 0x1a7   : > { %v943_v49 = vpop.f32.mrf.mxu0 }
 0x1a8   : > { %v973_v1 = vadd.f32 %v2218_v28, %v943_v49  ;;  %1220 = vmatpush.msra.mxu1 %v1201_v50  ;;  %v1199_v28 = vld [vmem:[#allocation7 + $0xa0] sm:$0xff] }
 0x1a9   : > { %1511 = vmatmul.msk.f32.gmra.mxu2 %vm340_vm1, %v2127_v57  ;;  %1515 = vmatmul.msk.f32.gmra.mxu1 %vm340_vm1, %v2167_v21  ;;  %v1197_v57 = vld [vmem:[#allocation7 + $0x90] sm:$0xff]  ;;  %v1196_v21 = vld [vmem:[#allocation7 + $0x88] sm:$0xff] }
 0x1aa   : > { %v989_v55 = vmul.f32 %v973_v1, %v2586_v33  ;;  %1221 = vmatpush.msra.mxu1 %v1200_v8 }
 0x1ac   : > { %v1005_v25 = vmax.f32 %v989_v55, 0.0  ;;  %1222 = vmatpush.msra.mxu1 %v1199_v28 }
 0x1ae   : > { %1139 = vmatpush.msrb.mxu3 %v1005_v25  ;;  %1223 = vmatpush.msra.mxu1 %v1198_v27 }
 0x1b0   : > { %1140 = vmatpush.msrb.mxu3 %v1004_v36  ;;  %1224 = vmatpush.msra.mxu1 %v1197_v57 }
 0x1b1   : > { %1512 = vmatmul.msk.f32.vlgmr.msrb.gmra.mxu3 %vm340_vm1, %v2121_v54  ;;  %1516 = vmatmul.msk.f32.vlgmr.msra.gmra.mxu2 %vm340_vm1, %v2132_v60  ;;  %v1195_v54 = vld [vmem:[#allocation7 + $0x80] sm:$0xff] }
 0x1b2   : > { %1586 = vmatpush.msra.mxu3 %v2503_v19  ;;  %1225 = vmatpush.msra.mxu1 %v1196_v21 }
 0x1b4   : > { %1587 = vmatpush.msra.mxu3 %v2505_v3  ;;  %1226 = vmatpush.msra.mxu1 %v1195_v54 }
 0x1b6   : > { %1588 = vmatpush.msra.mxu3 %v2521_v58 }
 0x1b8   : > { %1589 = vmatpush.msra.mxu3 %v2530_v4 }
 0x1b9   : > { %1513 = vmatmul.msk.f32.gmra.mxu3 %vm340_vm1, %v2143_v0  ;;  %1517 = vmatmul.msk.f32.gmra.mxu2 %vm340_vm1, %v2151_v6 }
 0x1ba   : > { %1590 = vmatpush.msra.mxu3 %v2543_v11 }
 0x1bc   : > { %1591 = vmatpush.msra.mxu3 %v1205_v40 }
 0x1be   : > { %1592 = vmatpush.msra.mxu3 %v1204_v52 }
 0x1c0   : > { %1593 = vmatpush.msra.mxu3 %v1203_v56 }
 0x1c2   : > { %1594 = vmatpush.msra.mxu3 %v1202_v20 }
 0x1c4   : > { %1595 = vmatpush.msra.mxu3 %v1201_v50 }
 0x1c6   : > { %1596 = vmatpush.msra.mxu3 %v1200_v8 }
 0x1c8   : > { %1597 = vmatpush.msra.mxu3 %v1199_v28 }
 0x1ca   : > { %1598 = vmatpush.msra.mxu3 %v1198_v27 }
 0x1cc   : > { %1599 = vmatpush.msra.mxu3 %v1197_v57 }
 0x1ce   : > { %1600 = vmatpush.msra.mxu3 %v1196_v21 }
 0x1d0   : > { %1601 = vmatpush.msra.mxu3 %v1195_v54 }
 0x1de   : > { %v1027_v60 = vpop.f32.mrf.mxu1 }
 0x1df   : > { %1227 = vmatmul.f32.vlgmr.msra.gmra.mxu1 %v1027_v60 }
 0x1e6   : > { %v1030_v0 = vpop.f32.mrf.mxu1 }
 0x1e7   : > { %1230 = vmatmul.f32.gmra.mxu1 %v1030_v0 }
 0x1f4   : > { %v1050_v6 = vpop.f32.mrf.mxu2 }
 0x1f5   : > { %1233 = vmatmul.f32.gmra.mxu1 %v1050_v6 }
 0x1fc   : > { %v1053_v19 = vpop.f32.mrf.mxu2 }
 0x1fd   : > { %1236 = vmatmul.f32.gmra.mxu1 %v1053_v19 }
 0x204   : > { %v1073_v3 = vpop.f32.mrf.mxu3 }
 0x205   : > { %1239 = vmatmul.f32.gmra.mxu1 %v1073_v3 }
 0x20c   : > { %v1076_v58 = vpop.f32.mrf.mxu3 }
 0x20d   : > { %1242 = vmatmul.f32.gmra.mxu1 %v1076_v58 }
 0x20e   : > { %v1096_v46 = vpop.f32.mrf.mxu1 }
 0x215   : > { %1245 = vmatmul.f32.gmra.mxu1 %v1096_v46 }
 0x216   : > { %v1099_v29 = vpop.f32.mrf.mxu1 }
 0x21d   : > { %1248 = vmatmul.f32.gmra.mxu1 %v1099_v29 }
 0x21e   : > { %v1165_v22 = vpop.f32.mrf.mxu1 }
 0x224   : > { %v1119_v4 = vpop.f32.mrf.mxu2 }
 0x225   : > { %1251 = vmatmul.f32.vlgmr.msra.gmra.mxu3 %v1119_v4 }
 0x226   : > { %v1168_v26 = vpop.f32.mrf.mxu1 }
 0x22c   : > { %v1122_v30 = vpop.f32.mrf.mxu2 }
 0x22d   : > { %1254 = vmatmul.f32.gmra.mxu3 %v1122_v30 }
 0x234   : > { %v1142_v31 = vpop.f32.mrf.mxu3  ;;  %v1188_v11 = vpop.f32.mrf.mxu2 }
 0x235   : > { %1257 = vmatmul.f32.gmra.mxu3 %v1142_v31 }
 0x23c   : > { %v1145_v38 = vpop.f32.mrf.mxu3  ;;  %v1191_v12 = vpop.f32.mrf.mxu2 }
 0x23d   : > { %1260 = vmatmul.f32.gmra.mxu3 %v1145_v38 }
 0x245   : > { %1263 = vmatmul.f32.gmra.mxu3 %v1165_v22 }
 0x24d   : > { %1266 = vmatmul.f32.gmra.mxu3 %v1168_v26 }
 0x255   : > { %1269 = vmatmul.f32.gmra.mxu3 %v1188_v11 }
 0x25c   : > { %v1228_v34 = vpop.f32.mrf.mxu1 }
 0x25d   : > { %v1281_v62 = vadd.f32 %v2610_v14, %v1228_v34  ;;  %1272 = vmatmul.f32.gmra.mxu3 %v1191_v12 }
 0x25f   : > { %v1297_v15 = vmul.f32 %v1281_v62, %v2229_v42 }
 0x261   : > { %v1313_v40 = vmax.f32 %v1297_v15, 0.0 }
 0x263   : > { %1329 = vst [vmem:[%s2616_s13] sm:$0xff] %v1313_v40 }
 0x264   : > { %v1231_v43 = vpop.f32.mrf.mxu1 }
 0x265   : > { %v1282_v44 = vadd.f32 %v2610_v14, %v1231_v43 }
 0x267   : > { %v1298_v45 = vmul.f32 %v1282_v44, %v2227_v41 }
 0x269   : > { %v1314_v53 = vmax.f32 %v1298_v45, 0.0 }
 0x26b   : > { %1330 = vst [vmem:[%s2616_s13 + $0x8] sm:$0xff] %v1314_v53 }
 0x272   : > { %v1234_v47 = vpop.f32.mrf.mxu1 }
 0x273   : > { %v1283_v42 = vadd.f32 %v2610_v14, %v1234_v47 }
 0x275   : > { %v1299_v13 = vmul.f32 %v1283_v42, %v2273_v23 }
 0x277   : > { %v1315_v52 = vmax.f32 %v1299_v13, 0.0 }
 0x279   : > { %1331 = vst [vmem:[%s2616_s13 + $0x10] sm:$0xff] %v1315_v52 }
 0x27a   : > { %v1237_v7 = vpop.f32.mrf.mxu1 }
 0x27b   : > { %v1284_v48 = vadd.f32 %v2610_v14, %v1237_v7 }
 0x27d   : > { %v1300_v32 = vmul.f32 %v1284_v48, %v2275_v24 }
 0x27f   : > { %v1316_v56 = vmax.f32 %v1300_v32, 0.0 }
 0x281   : > { %1332 = vst [vmem:[%s2616_s13 + $0x18] sm:$0xff] %v1316_v56 }
 0x282   : > { %v1240_v41 = vpop.f32.mrf.mxu1 }
 0x283   : > { %v1285_v59 = vadd.f32 %v2610_v14, %v1240_v41 }
 0x285   : > { %v1301_v5 = vmul.f32 %v1285_v59, %v2323_v9 }
 0x287   : > { %v1317_v49 = vmax.f32 %v1301_v5, 0.0 }
 0x289   : > { %1333 = vst [vmem:[%s2616_s13 + $0x20] sm:$0xff] %v1317_v49 }
 0x28a   : > { %v1243_v23 = vpop.f32.mrf.mxu1 }
 0x28b   : > { %v1286_v20 = vadd.f32 %v2610_v14, %v1243_v23 }
 0x28d   : > { %v1302_v1 = vmul.f32 %v1286_v20, %v2325_v10 }
 0x28f   : > { %v1318_v50 = vmax.f32 %v1302_v1, 0.0 }
 0x291   : > { %1334 = vst [vmem:[%s2616_s13 + $0x28] sm:$0xff] %v1318_v50 }
 0x292   : > { %v1246_v24 = vpop.f32.mrf.mxu1 }
 0x293   : > { %v1287_v17 = vadd.f32 %v2610_v14, %v1246_v24 }
 0x295   : > { %v1303_v55 = vmul.f32 %v1287_v17, %v2375_v63 }
 0x297   : > { %v1319_v8 = vmax.f32 %v1303_v55, 0.0 }
 0x299   : > { %1335 = vst [vmem:[%s2616_s13 + $0x30] sm:$0xff] %v1319_v8 }
 0x29a   : > { %v1249_v9 = vpop.f32.mrf.mxu1 }
 0x29b   : > { %v1288_v25 = vadd.f32 %v2610_v14, %v1249_v9 }
 0x29d   : > { %v1304_v28 = vmul.f32 %v1288_v25, %v2390_v51 }
 0x29f   : > { %v1320_v36 = vmax.f32 %v1304_v28, 0.0 }
 0x2a1   : > { %1336 = vst [vmem:[%s2616_s13 + $0x38] sm:$0xff] %v1320_v36 }
 0x2a8   : > { %v1252_v10 = vpop.f32.mrf.mxu3 }
 0x2a9   : > { %v1289_v27 = vadd.f32 %v2610_v14, %v1252_v10 }
 0x2ab   : > { %v1305_v57 = vmul.f32 %v1289_v27, %v2483_v35 }
 0x2ad   : > { %v1321_v21 = vmax.f32 %v1305_v57, 0.0 }
 0x2af   : > { %1337 = vst [vmem:[%s2616_s13 + $0x40] sm:$0xff] %v1321_v21 }
 0x2b0   : > { %v1255_v63 = vpop.f32.mrf.mxu3 }
 0x2b1   : > { %v1290_v54 = vadd.f32 %v2610_v14, %v1255_v63 }
 0x2b3   : > { %v1306_v60 = vmul.f32 %v1290_v54, %v2492_v37 }
 0x2b5   : > { %v1322_v0 = vmax.f32 %v1306_v60, 0.0 }
 0x2b7   : > { %1338 = vst [vmem:[%s2616_s13 + $0x48] sm:$0xff] %v1322_v0 }
 0x2b8   : > { %v1258_v51 = vpop.f32.mrf.mxu3 }
 0x2b9   : > { %v1291_v6 = vadd.f32 %v2610_v14, %v1258_v51 }
 0x2bb   : > { %v1307_v19 = vmul.f32 %v1291_v6, %v2584_v39 }
 0x2bd   : > { %v1323_v3 = vmax.f32 %v1307_v19, 0.0 }
 0x2bf   : > { %1339 = vst [vmem:[%s2616_s13 + $0x50] sm:$0xff] %v1323_v3 }
 0x2c0   : > { %v1261_v35 = vpop.f32.mrf.mxu3 }
 0x2c1   : > { %v1292_v58 = vadd.f32 %v2610_v14, %v1261_v35 }
 0x2c3   : > { %v1308_v46 = vmul.f32 %v1292_v58, %v2586_v33 }
 0x2c5   : > { %v1324_v29 = vmax.f32 %v1308_v46, 0.0 }
 0x2c7   : > { %1340 = vst [vmem:[%s2616_s13 + $0x58] sm:$0xff] %v1324_v29 }
 0x2c8   : > { %v1264_v37 = vpop.f32.mrf.mxu3 }
 0x2c9   : > { %v1293_v4 = vadd.f32 %v2610_v14, %v1264_v37 }
 0x2cb   : > { %v1309_v30 = vmul.f32 %v1293_v4, %v2459_v61 }
 0x2cd   : > { %v1325_v31 = vmax.f32 %v1309_v30, 0.0 }
 0x2cf   : > { %1341 = vst [vmem:[%s2616_s13 + $0x60] sm:$0xff] %v1325_v31 }
 0x2d0   : > { %v1267_v39 = vpop.f32.mrf.mxu3 }
 0x2d1   : > { %v1294_v38 = vadd.f32 %v2610_v14, %v1267_v39 }
 0x2d3   : > { %v1310_v22 = vmul.f32 %v1294_v38, %v2443_v16 }
 0x2d5   : > { %v1326_v26 = vmax.f32 %v1310_v22, 0.0 }
 0x2d7   : > { %1342 = vst [vmem:[%s2616_s13 + $0x68] sm:$0xff] %v1326_v26 }
 0x2d8   : > { %v1270_v33 = vpop.f32.mrf.mxu3 }
 0x2d9   : > { %v1295_v11 = vadd.f32 %v2610_v14, %v1270_v33 }
 0x2db   : > { %v1311_v12 = vmul.f32 %v1295_v11, %v2541_v18 }
 0x2dd   : > { %v1327_v34 = vmax.f32 %v1311_v12, 0.0 }
 0x2df   : > { %1343 = vst [vmem:[%s2616_s13 + $0x70] sm:$0xff] %v1327_v34 }
 0x2e0   : > { %v1273_v61 = vpop.f32.mrf.mxu3 }
 0x2e1   : > { %v1296_v16 = vadd.f32 %v2610_v14, %v1273_v61 }
 0x2e3   : > { %v1312_v62 = vmul.f32 %v1296_v16, %v2528_v2 }
 0x2e5   : > { %v1328_v15 = vmax.f32 %v1312_v62, 0.0 }
 0x2e7   : > { %1344 = vst [vmem:[%s2616_s13 + $0x78] sm:$0xff] %v1328_v15 }
 0x2e8   : > { %1822 = shalt.err (!%p1819_p9)
}
 0x2e9   : > { %s1877_s28 = smov 128   ;;  %s1878_s11 = smov 8  }
 0x2ea   : > { %1610 = dma.vmem_to_hbm [thread:$0]  (%p1974_p7), %s1360_s25, 2048, %s1362_s8, %s1346_s2, %s1877_s28, %s1877_s28, %s1878_s11  }
 0x2eb PF: > { %s1376_s12 = sand.u32 1, %s1857_s15   ;;  %p2751_p12 = scmp.ge.s32.totalorder %s1869_s18, 2 }
 0x2ec   : > { %s1377_s21 = scalar_lea.sflag [#allocation4], %s1376_s12 }
 0x2ed   : > { %p1624_p13 = pnand %p2751_p12, %p1939_p6 }
 0x2ef   : > { %p1625_p0 = pneg %p1624_p13 }
 0x2f1   : > { %1852 = dma.done.wait (%p1625_p0), %s1377_s21, 2048  }
 0x2f2   : > { %1854 = vsyncadd (%p1625_p0), %s1377_s21, 4294965248  ;;  %s2752_s14 = sld [smem:[#allocation13_spill]]  ;;  %p20_p3 = scmp.ge.s32.totalorder %s1957_s29, 4  }
 0x2f3   : > { %s2753_s17 = sld [smem:[#allocation14_spill]]  ;;  %s2754_s15 = smov %s1861_s16 }
 0x2f4   : > { %s2756_s18 = smov %s1957_s29  ;;  %22 = sbr.rel (!%p20_p3) target bundleno = 10 (0xa), region = 100 }
 0x2f8   : > { %s2755_s16 = smov %s2752_s14 }
 0x2f9   :  { %1383 = vsyncpa [#allocation3], 1 }
 0x2fa   :  { %1385 = vsyncpa [#allocation3 + $0x1], 1 }
 0x2fb   :  { %1386 = vsyncpa [#allocation6], 1 }
 0x2fc   :  { %1388 = vsyncpa [#allocation6 + $0x1], 1 }
 0x2fd   :  { %1389 = vsyncpa [#allocation4], 1 }
 0x2fe   :  { %1391 = vsyncpa [#allocation4 + $0x1], 1 }

</bundles_post_ra>
